<compile_context>
chip_gen: v7x
topology: tpu7x:2x2x1
jax: 0.10.0
libtpu: 0.0.40
codegen_flags: <defaults>
</compile_context>

<pallas_src>
import jax
import jax.numpy as jnp
from jax.experimental import pallas as pl
from jax.experimental.pallas import tpu as pltpu


def _add10_relu_kernel(x_ref, o_ref):
    # Elementwise hot path on the VPU: relu(x + 10).
    o_ref[...] = jnp.maximum(x_ref[...] + 10, 0).astype(o_ref.dtype)


def _add10_relu_whole_array(x):
    # Gridless: the full (small) array is one resident VMEM block.
    return pl.pallas_call(
        _add10_relu_kernel,
        out_shape=jax.ShapeDtypeStruct(x.shape, x.dtype),
        in_specs=[pl.BlockSpec(memory_space=pltpu.MemorySpace.VMEM)],
        out_specs=pl.BlockSpec(memory_space=pltpu.MemorySpace.VMEM),
    )(x)


def _largest_divisor_tile(dim, cap, align):
    # Largest multiple of `align` that divides `dim` and is <= cap.
    # Caller guarantees dim % align == 0.
    t = (min(dim, cap) // align) * align
    while dim % t != 0:
        t -= align
    return t


def _add10_relu_tiled(x):
    rows, cols = x.shape
    # Lane-dense tiles: >= (8,128) aligned; cap keeps in+out double-buffers
    # well under the 32 MiB scoped-VMEM default (and v7x's 64 MiB physical):
    # 512x1024 f32 = 2 MiB/buffer -> <= 8 MiB total with double buffering.
    tm = _largest_divisor_tile(rows, 512, 8)
    tn = _largest_divisor_tile(cols, 1024, 128)
    grid = (rows // tm, cols // tn)
    return pl.pallas_call(
        _add10_relu_kernel,
        out_shape=jax.ShapeDtypeStruct(x.shape, x.dtype),
        grid=grid,
        in_specs=[pl.BlockSpec((tm, tn), lambda i, j: (i, j))],
        out_specs=pl.BlockSpec((tm, tn), lambda i, j: (i, j)),
        compiler_params=pltpu.CompilerParams(
            dimension_semantics=("parallel", "parallel")),
    )(x)


def add10_relu(x):
    """Pallas equivalent of torch.nn.functional.relu(torch.add(x1, 10))."""
    if x.ndim == 2 and x.shape[0] % 8 == 0 and x.shape[1] % 128 == 0:
        return _add10_relu_tiled(x)
    # Small / unaligned shapes (e.g. the spec's (3, 4)): single full block.
    return _add10_relu_whole_array(x)


if __name__ == "__main__":
    key = jax.random.PRNGKey(0)

    # Spec-sized input, matching the PyTorch module: torch.randn(3, 4).
    x1 = jax.random.normal(key, (3, 4), dtype=jnp.float32)
    out_small = add10_relu(x1)
    jax.block_until_ready(out_small)
    ref_small = jnp.maximum(x1 + 10.0, 0.0)
    assert out_small.shape == (3, 4) and out_small.dtype == jnp.float32
    assert jnp.allclose(out_small, ref_small, atol=1e-6), "small-path mismatch"

    # Lane-dense input to exercise the tiled, multi-TC-friendly path.
    x2 = jax.random.normal(jax.random.PRNGKey(1), (256, 512), dtype=jnp.float32)
    out_big = add10_relu(x2)
    jax.block_until_ready(out_big)
    ref_big = jnp.maximum(x2 + 10.0, 0.0)
    assert jnp.allclose(out_big, ref_big, atol=1e-6), "tiled-path mismatch"

    print("KERNEL_OK")
</pallas_src>

<mosaic_0001>
module attributes {stable_mosaic.version = 11 : i64} {
  func.func @_add10_relu_kernel(%arg0: memref<3x4xf32, #tpu.memory_space<vmem>>, %arg1: memref<3x4xf32, #tpu.memory_space<vmem>>) attributes {dimension_semantics = [], scalar_prefetch = 0 : i64, scratch_operands = 0 : i64, tpu.core_type = #tpu.core_type<tc>} {
    %c0 = arith.constant 0 : index
    %c0_0 = arith.constant 0 : index
    %0 = vector.load %arg0[%c0, %c0_0] : memref<3x4xf32, #tpu.memory_space<vmem>>, vector<3x4xf32>
    %cst = arith.constant 1.000000e+01 : f32
    %1 = vector.broadcast %cst : f32 to vector<3x4xf32>
    %2 = arith.addf %0, %1 : vector<3x4xf32>
    %cst_1 = arith.constant 0.000000e+00 : f32
    %3 = vector.broadcast %cst_1 : f32 to vector<3x4xf32>
    %4 = arith.maximumf %2, %3 : vector<3x4xf32>
    %c0_2 = arith.constant 0 : index
    %c0_3 = arith.constant 0 : index
    %5 = vector.load %arg1[%c0_2, %c0_3] : memref<3x4xf32, #tpu.memory_space<vmem>>, vector<3x4xf32>
    tpu.vector_store %arg1[%c0_2, %c0_3], %4 {strides = array<i32>} : memref<3x4xf32, #tpu.memory_space<vmem>>, vector<3x4xf32>,
    return
  }
}

</mosaic_0001>

<bundles_post_ra>
// kernel: tpu_custom_call.1
= control target key start
LH: loop header
LB: loop body
LE: loop exit
PB: predicated region body
PF: predicated region fallthrough
CT: control target
= control target key end

     0   :  { %6 = vsyncpa [#allocation3], 0  ;;  %s127_s0 = inlined_call_operand.hbm [shape: f32[3,4], index: 0, kind: input, shape index: {}]   ;;  %s128_s1 = inlined_call_operand.hbm [shape: f32[3,4], index: 1, kind: output, shape index: {}]  }
   0x1   :  { %7 = vsyncpa [#allocation4], 0  ;;  %s91_s6 = smov [#allocation2]   ;;  %s43_s10 = scalar_lea.hbm %s127_s0, 64 }
   0x2   :  { %s14_s7 = sshll.u32 %s91_s6, 4  ;;  %p44_p0 = scmp.ne.s32.totalorder %s127_s0, %s43_s10  ;;  %s15_s7 = int_to_ptr.vmem [resolvable:$true] %s14_s7 }
   0x3   :  { %p47_p1 = scmp.lt.u32.totalorder %s43_s10, %s127_s0 }
   0x5   :  { %p49_p2 = pnand %p47_p1, %p44_p0 }
   0x7   :  { %52 = shalt.err (!%p49_p2)
}
   0x8   :  { %s53_s15 = scalar_lea.vmem %s15_s7, 64  ;;  %p58_p4 = scmp.lt.s32.totalorder %s15_s7, %s15_s7 }
   0x9   :  { %p54_p3 = scmp.ne.s32.totalorder %s15_s7, %s53_s15  ;;  %p59_p5 = scmp.lt.s32.totalorder %s53_s15, %s53_s15 }
   0xb   :  { %p60_p6 = por %p59_p5, %p58_p4 }
   0xd   :  { %p61_p7 = pnand %p60_p6, %p54_p3 }
   0xf   :  { %64 = shalt.err (!%p61_p7)
}
  0x10   :  { %17 = dma.hbm_to_vmem [thread:$0]  %s127_s0, 64, %s15_s7, [#allocation3]  }
  0x11   :  { %87 = dma.done.wait [#allocation3], 64  }
  0x12   :  { %88 = vsyncadd [#allocation3], 4294967232  ;;  %v21_v0 = vld [vmem:[#allocation2] sm:$0x7]  ;;  %s92_s18 = smov [#allocation5]   ;;  %vm24_vm0 = vcmask 26624  }
  0x13   :  { %s32_s19 = sshll.u32 %s92_s18, 4  ;;  %v22_v1 = vadd.f32 10.0, %v21_v0  ;;  %s33_s19 = int_to_ptr.vmem [resolvable:$true] %s32_s19 }
  0x14   :  { %s65_s20 = scalar_lea.vmem %s33_s19, 64  ;;  %p70_p9 = scmp.lt.s32.totalorder %s33_s19, %s33_s19 }
  0x15   :  { %v23_v2 = vmax.f32 %v22_v1, 0.0  ;;  %p66_p8 = scmp.ne.s32.totalorder %s33_s19, %s65_s20  ;;  %p71_p10 = scmp.lt.s32.totalorder %s65_s20, %s65_s20 }
  0x17   :  { %25 = vst.msk [vmem:[#allocation5] sm:$0x7] %vm24_vm0, %v23_v2  ;;  %p72_p11 = por %p71_p10, %p70_p9 }
  0x19   :  { %p73_p12 = pnand %p72_p11, %p66_p8 }
  0x1b   :  { %76 = shalt.err (!%p73_p12)
}
  0x1c   :  { %s77_s0 = scalar_lea.hbm %s128_s1, 64 }
  0x1d   :  { %p78_p13 = scmp.ne.s32.totalorder %s128_s1, %s77_s0  ;;  %p81_p0 = scmp.lt.u32.totalorder %s77_s0, %s128_s1 }
  0x1f   :  { %p83_p1 = pnand %p81_p0, %p78_p13 }
  0x21   :  { %86 = shalt.err (!%p83_p1)
}
  0x22   :  { %35 = dma.vmem_to_hbm [thread:$0]  %s33_s19, 64, %s128_s1, [#allocation4]  }
  0x23   :  { %89 = dma.done.wait [#allocation4], 64  }
  0x24   :  { %90 = vsyncadd [#allocation4], 4294967232 }
  0x25   :  { %39 = vsyncpa [#allocation3], 1 }
  0x26   :  { %40 = vsyncpa [#allocation4], 1 }

</bundles_post_ra>
